<compile_context>
chip_gen: v6e
topology: v6e:2x2x1
jax: 0.10.0
libtpu: 0.0.40
codegen_flags: <defaults>
</compile_context>

<pallas_src>
import jax
import jax.numpy as jnp
from jax import lax
from jax.experimental import pallas as pl
from jax.experimental.pallas import tpu as pltpu

F_IN = 4          # real input features  (Linear(4, 8))
F_OUT = 4         # real output features (Linear(8, 4))
NF = 8            # padded feature width for the packed weights
FAN_IN = (4, 8, 8)
_CHUNK = 1024     # lanes per register-resident inner chunk


def _round_up(x, m):
    return (x + m - 1) // m * m


def _tree_sum(terms):
    # Pairwise tree sum: keeps the serial accumulate chain short (latency).
    while len(terms) > 1:
        nxt = [terms[i] + terms[i + 1] for i in range(0, len(terms) - 1, 2)]
        if len(terms) % 2:
            nxt.append(terms[-1])
        terms = nxt
    return terms[0]


def _make_kernel(chunk):
    def kernel(x_ref, w_ref, b_ref, o_ref):
        # x_ref: [F_IN,  TN]      batch on lanes (lane-dense), features on sublanes
        # w_ref: [3, NF, NF, 1]   w_ref[l, i, o, 0] = W_l[o, i] (zero padded)
        # b_ref: [3, NF, 1]       b_ref[l, o, 0]    = b_l[o]    (zero padded)
        # o_ref: [F_OUT, TN]
        num_chunks = x_ref.shape[1] // chunk

        # Hoist the tiny weight/bias loads out of the chunk loop (loop invariant).
        w_cols = [[w_ref[l, i] for i in range(FAN_IN[l])] for l in range(3)]
        biases = [b_ref[l] for l in range(3)]

        def dense(layer, h, out_rows):
            # VPU broadcast-FMA over the *true* fan-in only (4/8/8).  Each term
            # is a full-lane-width [out_rows, chunk] op; bias rides the final add.
            terms = [
                w_cols[layer][i][:out_rows] * h[i:i + 1, :]
                for i in range(FAN_IN[layer])
            ]
            return _tree_sum(terms) + biases[layer][:out_rows]

        def chunk_body(c, carry):
            off = pl.multiple_of(c * chunk, chunk)
            x = x_ref[:, pl.ds(off, chunk)]                     # [4, chunk]
            h1 = jnp.maximum(dense(0, x, NF), 0.0)              # [8, chunk]
            h2 = jnp.maximum(dense(1, h1, NF), 0.0)             # [8, chunk]
            out = dense(2, h2, F_OUT)                           # [4, chunk]
            o_ref[:, pl.ds(off, chunk)] = out.astype(o_ref.dtype)
            return carry

        # Unroll by 2 (when the trip count allows) so independent chunks overlap
        # and the per-chunk latency chain is hidden behind VALU throughput.
        unroll = 2 if (num_chunks >= 2 and num_chunks % 2 == 0) else 1
        lax.fori_loop(0, num_chunks, chunk_body, None, unroll=unroll)

    return kernel


def _pack_params(params):
    """Pack the 6 PyTorch-convention tensors into two tiny resident operands."""

    def pad_w(w):  # [out, in] -> [NF, NF] zero padded
        out = jnp.zeros((NF, NF), jnp.float32)
        return out.at[: w.shape[0], : w.shape[1]].set(w.astype(jnp.float32))

    def pad_b(b):  # [out] -> [NF] zero padded
        out = jnp.zeros((NF,), jnp.float32)
        return out.at[: b.shape[0]].set(b.astype(jnp.float32))

    # w_packed[l, i, o, 0] = W_l[o, i]: indexing [l, i] in-kernel yields the
    # [NF, 1] weight column directly.
    w_packed = jnp.stack(
        [pad_w(params["w1"]).T, pad_w(params["w2"]).T, pad_w(params["w3"]).T]
    )[..., None]                                               # [3, NF, NF, 1]
    b_packed = jnp.stack(
        [pad_b(params["b1"]), pad_b(params["b2"]), pad_b(params["b3"])]
    )[..., None]                                               # [3, NF, 1]
    return w_packed, b_packed


def _choose_tiles(n, block_n):
    """Pick (tile lanes, chunk lanes); tile is always a multiple of chunk."""
    block_n = min(max(block_n, 128), 65536)        # VMEM-safe on all generations
    n128 = _round_up(max(n, 1), 128)
    if n128 <= _CHUNK:
        return n128, n128                          # one tiny tile, chunk == tile
    chunk = _CHUNK
    tn = min(_round_up(block_n, chunk), _round_up(n128, chunk))
    # Keep >= 4 grid steps when there is enough work so the DMA pipeline (and
    # both TensorCores on v7x via the "parallel" axis) stay busy.
    min_steps = 4
    if pl.cdiv(n128, tn) < min_steps and tn > chunk:
        tn = max(chunk, _round_up(pl.cdiv(n128, min_steps), chunk))
    return tn, chunk


def x_transform_forward_t(xt, params, block_n=32768):
    """Feature-major fast path.

    xt: [4, N] float32 (features on the leading axis, batch on the trailing
    axis).  Returns [4, N].  Callers that can keep activations feature-major
    avoid the [N,4] <-> [4,N] wrapper transposes entirely.
    """
    f_in, n = xt.shape
    assert f_in == F_IN
    w_packed, b_packed = _pack_params(params)
    tn, chunk = _choose_tiles(n, block_n)
    n_pad = _round_up(n, tn)

    xt = xt.astype(jnp.float32)
    if n_pad != n:
        xt = jnp.pad(xt, ((0, 0), (0, n_pad - n)))   # padded lanes are sliced off

    out = pl.pallas_call(
        _make_kernel(chunk),
        out_shape=jax.ShapeDtypeStruct((F_OUT, n_pad), jnp.float32),
        grid=(n_pad // tn,),
        in_specs=[
            pl.BlockSpec((F_IN, tn), lambda i: (0, i)),             # pipelined tiles
            pl.BlockSpec((3, NF, NF, 1), lambda i: (0, 0, 0, 0)),   # resident weights
            pl.BlockSpec((3, NF, 1), lambda i: (0, 0, 0)),          # resident biases
        ],
        out_specs=pl.BlockSpec((F_OUT, tn), lambda i: (0, i)),
        compiler_params=pltpu.CompilerParams(
            # Independent batch tiles -> shard the grid across v7x's 2 TCs.
            dimension_semantics=("parallel",),
            # Let XLA fuse the caller-side pad/transpose into the input fetch.
            allow_input_fusion=[True, False, False],
        ),
    )(xt, w_packed, b_packed)

    return out[:, :n] if n_pad != n else out


def x_transform_forward(x, params, block_n=32768):
    """x: [N, 4] float32 (PyTorch layout); returns [N, 4]."""
    n, f_in = x.shape
    assert f_in == F_IN
    # Single fused pad+transpose into the lane-dense [features, batch] layout;
    # callers that can plumb [4, N] should use x_transform_forward_t directly.
    out_t = x_transform_forward_t(x.astype(jnp.float32).T, params, block_n)
    # TODO(synk): the PyTorch module returns x.detach().numpy(); host transfer
    # has no in-kernel equivalent — callers can np.asarray() this result.
    return out_t.T


def init_params(key):
    """Deterministic init matching nn.Linear shapes: weight (out, in), bias (out,)."""
    ks = jax.random.split(key, 6)

    def lin(kw, kb, fan_in, fan_out):
        bound = 1.0 / jnp.sqrt(fan_in)
        w = jax.random.uniform(kw, (fan_out, fan_in), jnp.float32, -bound, bound)
        b = jax.random.uniform(kb, (fan_out,), jnp.float32, -bound, bound)
        return w, b

    w1, b1 = lin(ks[0], ks[1], 4, 8)
    w2, b2 = lin(ks[2], ks[3], 8, 8)
    w3, b3 = lin(ks[4], ks[5], 8, 4)
    return {"w1": w1, "b1": b1, "w2": w2, "b2": b2, "w3": w3, "b3": b3}


def reference_forward(x, params):
    hp = lax.Precision.HIGHEST  # keep the reference in true f32 (no bf16 MXU passes)
    h1 = jnp.maximum(jnp.dot(x, params["w1"].T, precision=hp) + params["b1"], 0.0)
    h2 = jnp.maximum(jnp.dot(h1, params["w2"].T, precision=hp) + params["b2"], 0.0)
    return jnp.dot(h2, params["w3"].T, precision=hp) + params["b3"]


if __name__ == "__main__":
    key = jax.random.PRNGKey(0)
    k_x, k_x2, k_p = jax.random.split(key, 3)
    params = init_params(k_p)
    fwd = jax.jit(x_transform_forward)

    # Small smoke test: 8 samples x 4 features (matches Linear(4, ...)).
    x_small = jax.random.normal(k_x, (8, 4), jnp.float32)
    out_small = jax.block_until_ready(fwd(x_small, params))
    ref_small = reference_forward(x_small, params)
    assert out_small.shape == (8, 4) and out_small.dtype == jnp.float32
    assert jnp.allclose(out_small, ref_small, atol=1e-4, rtol=1e-4)

    # Larger batch exercising the multi-tile grid and the in-kernel chunk loop.
    x_big = jax.random.normal(k_x2, (16384, 4), jnp.float32)
    out_big = jax.block_until_ready(fwd(x_big, params))
    ref_big = reference_forward(x_big, params)
    assert out_big.shape == (16384, 4)
    assert jnp.allclose(out_big, ref_big, atol=1e-4, rtol=1e-4)

    print("KERNEL_OK")
</pallas_src>

<mosaic_0001>
module attributes {stable_mosaic.version = 11 : i64} {
  func.func @kernel(%arg0: i32, %arg1: memref<4x128xf32, #tpu.memory_space<vmem>>, %arg2: memref<3x8x8x1xf32, #tpu.memory_space<vmem>>, %arg3: memref<3x8x1xf32, #tpu.memory_space<vmem>>, %arg4: memref<4x128xf32, #tpu.memory_space<vmem>>) attributes {dimension_semantics = [#tpu.dimension_semantics<parallel>], iteration_bounds = array<i64: 1>, scalar_prefetch = 0 : i64, scratch_operands = 0 : i64, tpu.core_type = #tpu.core_type<tc>, window_params = [{transform_indices = @transform_0, window_bounds = array<i64: 4, 128>}, {pipeline_mode = #tpu.pipeline_mode<synchronous>, transform_indices = @transform_1, window_bounds = array<i64: 3, 8, 8, 1>}, {pipeline_mode = #tpu.pipeline_mode<synchronous>, transform_indices = @transform_2, window_bounds = array<i64: 3, 8, 1>}, {transform_indices = @transform_3, window_bounds = array<i64: 4, 128>}]} {
    %c0 = arith.constant 0 : index
    %c0_0 = arith.constant 0 : index
    %c0_1 = arith.constant 0 : index
    %c0_2 = arith.constant 0 : index
    %0 = vector.load %arg2[%c0, %c0_0, %c0_1, %c0_2] : memref<3x8x8x1xf32, #tpu.memory_space<vmem>>, vector<1x1x8x1xf32>
    %1 = vector.shape_cast %0 : vector<1x1x8x1xf32> to vector<8x1xf32>
    %c0_3 = arith.constant 0 : index
    %c1 = arith.constant 1 : index
    %c0_4 = arith.constant 0 : index
    %c0_5 = arith.constant 0 : index
    %2 = vector.load %arg2[%c0_3, %c1, %c0_4, %c0_5] : memref<3x8x8x1xf32, #tpu.memory_space<vmem>>, vector<1x1x8x1xf32>
    %3 = vector.shape_cast %2 : vector<1x1x8x1xf32> to vector<8x1xf32>
    %c0_6 = arith.constant 0 : index
    %c2 = arith.constant 2 : index
    %c0_7 = arith.constant 0 : index
    %c0_8 = arith.constant 0 : index
    %4 = vector.load %arg2[%c0_6, %c2, %c0_7, %c0_8] : memref<3x8x8x1xf32, #tpu.memory_space<vmem>>, vector<1x1x8x1xf32>
    %5 = vector.shape_cast %4 : vector<1x1x8x1xf32> to vector<8x1xf32>
    %c0_9 = arith.constant 0 : index
    %c3 = arith.constant 3 : index
    %c0_10 = arith.constant 0 : index
    %c0_11 = arith.constant 0 : index
    %6 = vector.load %arg2[%c0_9, %c3, %c0_10, %c0_11] : memref<3x8x8x1xf32, #tpu.memory_space<vmem>>, vector<1x1x8x1xf32>
    %7 = vector.shape_cast %6 : vector<1x1x8x1xf32> to vector<8x1xf32>
    %c1_12 = arith.constant 1 : index
    %c0_13 = arith.constant 0 : index
    %c0_14 = arith.constant 0 : index
    %c0_15 = arith.constant 0 : index
    %8 = vector.load %arg2[%c1_12, %c0_13, %c0_14, %c0_15] : memref<3x8x8x1xf32, #tpu.memory_space<vmem>>, vector<1x1x8x1xf32>
    %9 = vector.shape_cast %8 : vector<1x1x8x1xf32> to vector<8x1xf32>
    %c1_16 = arith.constant 1 : index
    %c1_17 = arith.constant 1 : index
    %c0_18 = arith.constant 0 : index
    %c0_19 = arith.constant 0 : index
    %10 = vector.load %arg2[%c1_16, %c1_17, %c0_18, %c0_19] : memref<3x8x8x1xf32, #tpu.memory_space<vmem>>, vector<1x1x8x1xf32>
    %11 = vector.shape_cast %10 : vector<1x1x8x1xf32> to vector<8x1xf32>
    %c1_20 = arith.constant 1 : index
    %c2_21 = arith.constant 2 : index
    %c0_22 = arith.constant 0 : index
    %c0_23 = arith.constant 0 : index
    %12 = vector.load %arg2[%c1_20, %c2_21, %c0_22, %c0_23] : memref<3x8x8x1xf32, #tpu.memory_space<vmem>>, vector<1x1x8x1xf32>
    %13 = vector.shape_cast %12 : vector<1x1x8x1xf32> to vector<8x1xf32>
    %c1_24 = arith.constant 1 : index
    %c3_25 = arith.constant 3 : index
    %c0_26 = arith.constant 0 : index
    %c0_27 = arith.constant 0 : index
    %14 = vector.load %arg2[%c1_24, %c3_25, %c0_26, %c0_27] : memref<3x8x8x1xf32, #tpu.memory_space<vmem>>, vector<1x1x8x1xf32>
    %15 = vector.shape_cast %14 : vector<1x1x8x1xf32> to vector<8x1xf32>
    %c1_28 = arith.constant 1 : index
    %c4 = arith.constant 4 : index
    %c0_29 = arith.constant 0 : index
    %c0_30 = arith.constant 0 : index
    %16 = vector.load %arg2[%c1_28, %c4, %c0_29, %c0_30] : memref<3x8x8x1xf32, #tpu.memory_space<vmem>>, vector<1x1x8x1xf32>
    %17 = vector.shape_cast %16 : vector<1x1x8x1xf32> to vector<8x1xf32>
    %c1_31 = arith.constant 1 : index
    %c5 = arith.constant 5 : index
    %c0_32 = arith.constant 0 : index
    %c0_33 = arith.constant 0 : index
    %18 = vector.load %arg2[%c1_31, %c5, %c0_32, %c0_33] : memref<3x8x8x1xf32, #tpu.memory_space<vmem>>, vector<1x1x8x1xf32>
    %19 = vector.shape_cast %18 : vector<1x1x8x1xf32> to vector<8x1xf32>
    %c1_34 = arith.constant 1 : index
    %c6 = arith.constant 6 : index
    %c0_35 = arith.constant 0 : index
    %c0_36 = arith.constant 0 : index
    %20 = vector.load %arg2[%c1_34, %c6, %c0_35, %c0_36] : memref<3x8x8x1xf32, #tpu.memory_space<vmem>>, vector<1x1x8x1xf32>
    %21 = vector.shape_cast %20 : vector<1x1x8x1xf32> to vector<8x1xf32>
    %c1_37 = arith.constant 1 : index
    %c7 = arith.constant 7 : index
    %c0_38 = arith.constant 0 : index
    %c0_39 = arith.constant 0 : index
    %22 = vector.load %arg2[%c1_37, %c7, %c0_38, %c0_39] : memref<3x8x8x1xf32, #tpu.memory_space<vmem>>, vector<1x1x8x1xf32>
    %23 = vector.shape_cast %22 : vector<1x1x8x1xf32> to vector<8x1xf32>
    %c2_40 = arith.constant 2 : index
    %c0_41 = arith.constant 0 : index
    %c0_42 = arith.constant 0 : index
    %c0_43 = arith.constant 0 : index
    %24 = vector.load %arg2[%c2_40, %c0_41, %c0_42, %c0_43] : memref<3x8x8x1xf32, #tpu.memory_space<vmem>>, vector<1x1x8x1xf32>
    %25 = vector.shape_cast %24 : vector<1x1x8x1xf32> to vector<8x1xf32>
    %c2_44 = arith.constant 2 : index
    %c1_45 = arith.constant 1 : index
    %c0_46 = arith.constant 0 : index
    %c0_47 = arith.constant 0 : index
    %26 = vector.load %arg2[%c2_44, %c1_45, %c0_46, %c0_47] : memref<3x8x8x1xf32, #tpu.memory_space<vmem>>, vector<1x1x8x1xf32>
    %27 = vector.shape_cast %26 : vector<1x1x8x1xf32> to vector<8x1xf32>
    %c2_48 = arith.constant 2 : index
    %c2_49 = arith.constant 2 : index
    %c0_50 = arith.constant 0 : index
    %c0_51 = arith.constant 0 : index
    %28 = vector.load %arg2[%c2_48, %c2_49, %c0_50, %c0_51] : memref<3x8x8x1xf32, #tpu.memory_space<vmem>>, vector<1x1x8x1xf32>
    %29 = vector.shape_cast %28 : vector<1x1x8x1xf32> to vector<8x1xf32>
    %c2_52 = arith.constant 2 : index
    %c3_53 = arith.constant 3 : index
    %c0_54 = arith.constant 0 : index
    %c0_55 = arith.constant 0 : index
    %30 = vector.load %arg2[%c2_52, %c3_53, %c0_54, %c0_55] : memref<3x8x8x1xf32, #tpu.memory_space<vmem>>, vector<1x1x8x1xf32>
    %31 = vector.shape_cast %30 : vector<1x1x8x1xf32> to vector<8x1xf32>
    %c2_56 = arith.constant 2 : index
    %c4_57 = arith.constant 4 : index
    %c0_58 = arith.constant 0 : index
    %c0_59 = arith.constant 0 : index
    %32 = vector.load %arg2[%c2_56, %c4_57, %c0_58, %c0_59] : memref<3x8x8x1xf32, #tpu.memory_space<vmem>>, vector<1x1x8x1xf32>
    %33 = vector.shape_cast %32 : vector<1x1x8x1xf32> to vector<8x1xf32>
    %c2_60 = arith.constant 2 : index
    %c5_61 = arith.constant 5 : index
    %c0_62 = arith.constant 0 : index
    %c0_63 = arith.constant 0 : index
    %34 = vector.load %arg2[%c2_60, %c5_61, %c0_62, %c0_63] : memref<3x8x8x1xf32, #tpu.memory_space<vmem>>, vector<1x1x8x1xf32>
    %35 = vector.shape_cast %34 : vector<1x1x8x1xf32> to vector<8x1xf32>
    %c2_64 = arith.constant 2 : index
    %c6_65 = arith.constant 6 : index
    %c0_66 = arith.constant 0 : index
    %c0_67 = arith.constant 0 : index
    %36 = vector.load %arg2[%c2_64, %c6_65, %c0_66, %c0_67] : memref<3x8x8x1xf32, #tpu.memory_space<vmem>>, vector<1x1x8x1xf32>
    %37 = vector.shape_cast %36 : vector<1x1x8x1xf32> to vector<8x1xf32>
    %c2_68 = arith.constant 2 : index
    %c7_69 = arith.constant 7 : index
    %c0_70 = arith.constant 0 : index
    %c0_71 = arith.constant 0 : index
    %38 = vector.load %arg2[%c2_68, %c7_69, %c0_70, %c0_71] : memref<3x8x8x1xf32, #tpu.memory_space<vmem>>, vector<1x1x8x1xf32>
    %39 = vector.shape_cast %38 : vector<1x1x8x1xf32> to vector<8x1xf32>
    %c0_72 = arith.constant 0 : index
    %c0_73 = arith.constant 0 : index
    %c0_74 = arith.constant 0 : index
    %40 = vector.load %arg3[%c0_72, %c0_73, %c0_74] : memref<3x8x1xf32, #tpu.memory_space<vmem>>, vector<1x8x1xf32>
    %41 = vector.shape_cast %40 : vector<1x8x1xf32> to vector<8x1xf32>
    %c1_75 = arith.constant 1 : index
    %c0_76 = arith.constant 0 : index
    %c0_77 = arith.constant 0 : index
    %42 = vector.load %arg3[%c1_75, %c0_76, %c0_77] : memref<3x8x1xf32, #tpu.memory_space<vmem>>, vector<1x8x1xf32>
    %43 = vector.shape_cast %42 : vector<1x8x1xf32> to vector<8x1xf32>
    %c2_78 = arith.constant 2 : index
    %c0_79 = arith.constant 0 : index
    %c0_80 = arith.constant 0 : index
    %44 = vector.load %arg3[%c2_78, %c0_79, %c0_80] : memref<3x8x1xf32, #tpu.memory_space<vmem>>, vector<1x8x1xf32>
    %45 = vector.shape_cast %44 : vector<1x8x1xf32> to vector<8x1xf32>
    %c0_i32 = arith.constant 0 : i32
    %c128_i32 = arith.constant 128 : i32
    %46 = arith.muli %c0_i32, %c128_i32 : i32
    %47 = tpu.assume_multiple %46, 128 : i32
    %c0_81 = arith.constant 0 : index
    %48 = arith.index_cast %47 : i32 to index
    %49 = vector.load %arg1[%c0_81, %48] : memref<4x128xf32, #tpu.memory_space<vmem>>, vector<4x128xf32>
    %50 = vector.extract_strided_slice %49 {offsets = [0, 0], sizes = [1, 128], strides = [1, 1]} : vector<4x128xf32> to vector<1x128xf32>
    %51 = vector.broadcast %1 : vector<8x1xf32> to vector<8x128xf32>
    %52 = vector.broadcast %50 : vector<1x128xf32> to vector<8x128xf32>
    %53 = arith.mulf %51, %52 : vector<8x128xf32>
    %54 = vector.extract_strided_slice %49 {offsets = [1, 0], sizes = [1, 128], strides = [1, 1]} : vector<4x128xf32> to vector<1x128xf32>
    %55 = vector.broadcast %3 : vector<8x1xf32> to vector<8x128xf32>
    %56 = vector.broadcast %54 : vector<1x128xf32> to vector<8x128xf32>
    %57 = arith.mulf %55, %56 : vector<8x128xf32>
    %58 = vector.extract_strided_slice %49 {offsets = [2, 0], sizes = [1, 128], strides = [1, 1]} : vector<4x128xf32> to vector<1x128xf32>
    %59 = vector.broadcast %5 : vector<8x1xf32> to vector<8x128xf32>
    %60 = vector.broadcast %58 : vector<1x128xf32> to vector<8x128xf32>
    %61 = arith.mulf %59, %60 : vector<8x128xf32>
    %62 = vector.extract_strided_slice %49 {offsets = [3, 0], sizes = [1, 128], strides = [1, 1]} : vector<4x128xf32> to vector<1x128xf32>
    %63 = vector.broadcast %7 : vector<8x1xf32> to vector<8x128xf32>
    %64 = vector.broadcast %62 : vector<1x128xf32> to vector<8x128xf32>
    %65 = arith.mulf %63, %64 : vector<8x128xf32>
    %66 = arith.addf %53, %57 : vector<8x128xf32>
    %67 = arith.addf %61, %65 : vector<8x128xf32>
    %68 = arith.addf %66, %67 : vector<8x128xf32>
    %69 = vector.broadcast %41 : vector<8x1xf32> to vector<8x128xf32>
    %70 = arith.addf %68, %69 : vector<8x128xf32>
    %cst = arith.constant 0.000000e+00 : f32
    %71 = vector.broadcast %cst : f32 to vector<8x128xf32>
    %72 = arith.maximumf %70, %71 : vector<8x128xf32>
    %73 = vector.extract_strided_slice %72 {offsets = [0, 0], sizes = [1, 128], strides = [1, 1]} : vector<8x128xf32> to vector<1x128xf32>
    %74 = vector.broadcast %9 : vector<8x1xf32> to vector<8x128xf32>
    %75 = vector.broadcast %73 : vector<1x128xf32> to vector<8x128xf32>
    %76 = arith.mulf %74, %75 : vector<8x128xf32>
    %77 = vector.extract_strided_slice %72 {offsets = [1, 0], sizes = [1, 128], strides = [1, 1]} : vector<8x128xf32> to vector<1x128xf32>
    %78 = vector.broadcast %11 : vector<8x1xf32> to vector<8x128xf32>
    %79 = vector.broadcast %77 : vector<1x128xf32> to vector<8x128xf32>
    %80 = arith.mulf %78, %79 : vector<8x128xf32>
    %81 = vector.extract_strided_slice %72 {offsets = [2, 0], sizes = [1, 128], strides = [1, 1]} : vector<8x128xf32> to vector<1x128xf32>
    %82 = vector.broadcast %13 : vector<8x1xf32> to vector<8x128xf32>
    %83 = vector.broadcast %81 : vector<1x128xf32> to vector<8x128xf32>
    %84 = arith.mulf %82, %83 : vector<8x128xf32>
    %85 = vector.extract_strided_slice %72 {offsets = [3, 0], sizes = [1, 128], strides = [1, 1]} : vector<8x128xf32> to vector<1x128xf32>
    %86 = vector.broadcast %15 : vector<8x1xf32> to vector<8x128xf32>
    %87 = vector.broadcast %85 : vector<1x128xf32> to vector<8x128xf32>
    %88 = arith.mulf %86, %87 : vector<8x128xf32>
    %89 = vector.extract_strided_slice %72 {offsets = [4, 0], sizes = [1, 128], strides = [1, 1]} : vector<8x128xf32> to vector<1x128xf32>
    %90 = vector.broadcast %17 : vector<8x1xf32> to vector<8x128xf32>
    %91 = vector.broadcast %89 : vector<1x128xf32> to vector<8x128xf32>
    %92 = arith.mulf %90, %91 : vector<8x128xf32>
    %93 = vector.extract_strided_slice %72 {offsets = [5, 0], sizes = [1, 128], strides = [1, 1]} : vector<8x128xf32> to vector<1x128xf32>
    %94 = vector.broadcast %19 : vector<8x1xf32> to vector<8x128xf32>
    %95 = vector.broadcast %93 : vector<1x128xf32> to vector<8x128xf32>
    %96 = arith.mulf %94, %95 : vector<8x128xf32>
    %97 = vector.extract_strided_slice %72 {offsets = [6, 0], sizes = [1, 128], strides = [1, 1]} : vector<8x128xf32> to vector<1x128xf32>
    %98 = vector.broadcast %21 : vector<8x1xf32> to vector<8x128xf32>
    %99 = vector.broadcast %97 : vector<1x128xf32> to vector<8x128xf32>
    %100 = arith.mulf %98, %99 : vector<8x128xf32>
    %101 = vector.extract_strided_slice %72 {offsets = [7, 0], sizes = [1, 128], strides = [1, 1]} : vector<8x128xf32> to vector<1x128xf32>
    %102 = vector.broadcast %23 : vector<8x1xf32> to vector<8x128xf32>
    %103 = vector.broadcast %101 : vector<1x128xf32> to vector<8x128xf32>
    %104 = arith.mulf %102, %103 : vector<8x128xf32>
    %105 = arith.addf %76, %80 : vector<8x128xf32>
    %106 = arith.addf %84, %88 : vector<8x128xf32>
    %107 = arith.addf %92, %96 : vector<8x128xf32>
    %108 = arith.addf %100, %104 : vector<8x128xf32>
    %109 = arith.addf %105, %106 : vector<8x128xf32>
    %110 = arith.addf %107, %108 : vector<8x128xf32>
    %111 = arith.addf %109, %110 : vector<8x128xf32>
    %112 = vector.broadcast %43 : vector<8x1xf32> to vector<8x128xf32>
    %113 = arith.addf %111, %112 : vector<8x128xf32>
    %cst_82 = arith.constant 0.000000e+00 : f32
    %114 = vector.broadcast %cst_82 : f32 to vector<8x128xf32>
    %115 = arith.maximumf %113, %114 : vector<8x128xf32>
    %116 = vector.extract_strided_slice %25 {offsets = [0, 0], sizes = [4, 1], strides = [1, 1]} : vector<8x1xf32> to vector<4x1xf32>
    %117 = vector.extract_strided_slice %115 {offsets = [0, 0], sizes = [1, 128], strides = [1, 1]} : vector<8x128xf32> to vector<1x128xf32>
    %118 = vector.broadcast %116 : vector<4x1xf32> to vector<4x128xf32>
    %119 = vector.broadcast %117 : vector<1x128xf32> to vector<4x128xf32>
    %120 = arith.mulf %118, %119 : vector<4x128xf32>
    %121 = vector.extract_strided_slice %27 {offsets = [0, 0], sizes = [4, 1], strides = [1, 1]} : vector<8x1xf32> to vector<4x1xf32>
    %122 = vector.extract_strided_slice %115 {offsets = [1, 0], sizes = [1, 128], strides = [1, 1]} : vector<8x128xf32> to vector<1x128xf32>
    %123 = vector.broadcast %121 : vector<4x1xf32> to vector<4x128xf32>
    %124 = vector.broadcast %122 : vector<1x128xf32> to vector<4x128xf32>
    %125 = arith.mulf %123, %124 : vector<4x128xf32>
    %126 = vector.extract_strided_slice %29 {offsets = [0, 0], sizes = [4, 1], strides = [1, 1]} : vector<8x1xf32> to vector<4x1xf32>
    %127 = vector.extract_strided_slice %115 {offsets = [2, 0], sizes = [1, 128], strides = [1, 1]} : vector<8x128xf32> to vector<1x128xf32>
    %128 = vector.broadcast %126 : vector<4x1xf32> to vector<4x128xf32>
    %129 = vector.broadcast %127 : vector<1x128xf32> to vector<4x128xf32>
    %130 = arith.mulf %128, %129 : vector<4x128xf32>
    %131 = vector.extract_strided_slice %31 {offsets = [0, 0], sizes = [4, 1], strides = [1, 1]} : vector<8x1xf32> to vector<4x1xf32>
    %132 = vector.extract_strided_slice %115 {offsets = [3, 0], sizes = [1, 128], strides = [1, 1]} : vector<8x128xf32> to vector<1x128xf32>
    %133 = vector.broadcast %131 : vector<4x1xf32> to vector<4x128xf32>
    %134 = vector.broadcast %132 : vector<1x128xf32> to vector<4x128xf32>
    %135 = arith.mulf %133, %134 : vector<4x128xf32>
    %136 = vector.extract_strided_slice %33 {offsets = [0, 0], sizes = [4, 1], strides = [1, 1]} : vector<8x1xf32> to vector<4x1xf32>
    %137 = vector.extract_strided_slice %115 {offsets = [4, 0], sizes = [1, 128], strides = [1, 1]} : vector<8x128xf32> to vector<1x128xf32>
    %138 = vector.broadcast %136 : vector<4x1xf32> to vector<4x128xf32>
    %139 = vector.broadcast %137 : vector<1x128xf32> to vector<4x128xf32>
    %140 = arith.mulf %138, %139 : vector<4x128xf32>
    %141 = vector.extract_strided_slice %35 {offsets = [0, 0], sizes = [4, 1], strides = [1, 1]} : vector<8x1xf32> to vector<4x1xf32>
    %142 = vector.extract_strided_slice %115 {offsets = [5, 0], sizes = [1, 128], strides = [1, 1]} : vector<8x128xf32> to vector<1x128xf32>
    %143 = vector.broadcast %141 : vector<4x1xf32> to vector<4x128xf32>
    %144 = vector.broadcast %142 : vector<1x128xf32> to vector<4x128xf32>
    %145 = arith.mulf %143, %144 : vector<4x128xf32>
    %146 = vector.extract_strided_slice %37 {offsets = [0, 0], sizes = [4, 1], strides = [1, 1]} : vector<8x1xf32> to vector<4x1xf32>
    %147 = vector.extract_strided_slice %115 {offsets = [6, 0], sizes = [1, 128], strides = [1, 1]} : vector<8x128xf32> to vector<1x128xf32>
    %148 = vector.broadcast %146 : vector<4x1xf32> to vector<4x128xf32>
    %149 = vector.broadcast %147 : vector<1x128xf32> to vector<4x128xf32>
    %150 = arith.mulf %148, %149 : vector<4x128xf32>
    %151 = vector.extract_strided_slice %39 {offsets = [0, 0], sizes = [4, 1], strides = [1, 1]} : vector<8x1xf32> to vector<4x1xf32>
    %152 = vector.extract_strided_slice %115 {offsets = [7, 0], sizes = [1, 128], strides = [1, 1]} : vector<8x128xf32> to vector<1x128xf32>
    %153 = vector.broadcast %151 : vector<4x1xf32> to vector<4x128xf32>
    %154 = vector.broadcast %152 : vector<1x128xf32> to vector<4x128xf32>
    %155 = arith.mulf %153, %154 : vector<4x128xf32>
    %156 = arith.addf %120, %125 : vector<4x128xf32>
    %157 = arith.addf %130, %135 : vector<4x128xf32>
    %158 = arith.addf %140, %145 : vector<4x128xf32>
    %159 = arith.addf %150, %155 : vector<4x128xf32>
    %160 = arith.addf %156, %157 : vector<4x128xf32>
    %161 = arith.addf %158, %159 : vector<4x128xf32>
    %162 = arith.addf %160, %161 : vector<4x128xf32>
    %163 = vector.extract_strided_slice %45 {offsets = [0, 0], sizes = [4, 1], strides = [1, 1]} : vector<8x1xf32> to vector<4x1xf32>
    %164 = vector.broadcast %163 : vector<4x1xf32> to vector<4x128xf32>
    %165 = arith.addf %162, %164 : vector<4x128xf32>
    %c0_83 = arith.constant 0 : index
    %166 = arith.index_cast %47 : i32 to index
    %167 = vector.load %arg4[%c0_83, %166] : memref<4x128xf32, #tpu.memory_space<vmem>>, vector<4x128xf32>
    tpu.vector_store %arg4[%c0_83, %166], %165 {strides = array<i32>} : memref<4x128xf32, #tpu.memory_space<vmem>>, vector<4x128xf32>,
    %c1_i32 = arith.constant 1 : i32
    return
  }
  func.func @transform_0(%arg0: i32) -> (i32, i32) {
    %c0_i32 = arith.constant 0 : i32
    %c0_i32_0 = arith.constant 0 : i32
    return %c0_i32, %arg0 : i32, i32
  }
  func.func @transform_1(%arg0: i32) -> (i32, i32, i32, i32) {
    %c0_i32 = arith.constant 0 : i32
    %c0_i32_0 = arith.constant 0 : i32
    %c0_i32_1 = arith.constant 0 : i32
    %c0_i32_2 = arith.constant 0 : i32
    %c0_i32_3 = arith.constant 0 : i32
    return %c0_i32, %c0_i32_0, %c0_i32_1, %c0_i32_2 : i32, i32, i32, i32
  }
  func.func @transform_2(%arg0: i32) -> (i32, i32, i32) {
    %c0_i32 = arith.constant 0 : i32
    %c0_i32_0 = arith.constant 0 : i32
    %c0_i32_1 = arith.constant 0 : i32
    %c0_i32_2 = arith.constant 0 : i32
    return %c0_i32, %c0_i32_0, %c0_i32_1 : i32, i32, i32
  }
  func.func @transform_3(%arg0: i32) -> (i32, i32) {
    %c0_i32 = arith.constant 0 : i32
    %c0_i32_0 = arith.constant 0 : i32
    return %c0_i32, %arg0 : i32, i32
  }
}

</mosaic_0001>

<bundles_post_ra>
// kernel: x_transform_forward.2
= control target key start
LH: loop header
LB: loop body
LE: loop exit
PB: predicated region body
PF: predicated region fallthrough
CT: control target
= control target key end

     0   :  { %s476_s0 = inlined_call_operand.vmem [shape: f32[3,8,8,1], index: 0, kind: input, shape index: {}]   ;;  %s477_s1 = inlined_call_operand.vmem [shape: f32[3,8,1], index: 1, kind: input, shape index: {}]   ;;  %s478_s2 = inlined_call_operand.vmem [shape: f32[4,8], index: 2, kind: input, shape index: {}]   ;;  %s479_s3 = inlined_call_operand.<no memory space> [shape: f32[], index: 3, kind: input, shape index: {}]   ;;  %s480_s4 = inlined_call_operand.vmem [shape: f32[4,128], index: 4, kind: output, shape index: {}]  }
   0x1   :  { %v9_v0 = vstv %s479_s3 }
   0x2   :  { %v318_v1 = vld [vmem:[%s476_s0 + $0x10] sm:$0xff]  ;;  %v30_v2 = vld [vmem:[%s476_s0] sm:$0xff]  ;;  %v17_v3 = vlaneseq  ;;  %v341_v4 = vmov 0   ;;  %v319_v7 = vld [vmem:[%s476_s0 + $0x18] sm:$0xff] }
   0x3   :  { %340 = vset.pattern.permute.xlu1 %v341_v4  ;;  %339 = vset.pattern.permute.xlu0 %v341_v4  ;;  %v317_v8 = vld [vmem:[%s476_s0 + $0x8] sm:$0xff]  ;;  %v320_v9 = vld [vmem:[%s476_s0 + $0x40] sm:$0xff]  ;;  %v322_v14 = vld [vmem:[%s476_s0 + $0x50] sm:$0xff] }
   0x4   :  { %97 = vperm.xlu1 %340, %v318_v1   ;;  %77 = vperm.xlu0 %339, %v30_v2   ;;  %v376_v5 = vshrl.u32 %v17_v3, 7  ;;  %v23_v6 = vand.u32 127, %v17_v3  ;;  %v69_v10 = vld [vmem:[%s477_s1] sm:$0xff]  ;;  %v321_v15 = vld [vmem:[%s476_s0 + $0x48] sm:$0xff]  ;;  %v323_v17 = vld [vmem:[%s476_s0 + $0x58] sm:$0xff] }
   0x5   :  { %v16_v11 = vld [vmem:[%s478_s2] sm:$0xf]  ;;  %v326_v18 = vld [vmem:[%s476_s0 + $0x70] sm:$0xff]  ;;  %v325_v19 = vld [vmem:[%s476_s0 + $0x68] sm:$0xff] }
   0x6   :  { %vm20_vm0 = vcmp.lt.s32.totalorder %v376_v5, 4  ;;  %vm25_vm1 = vcmp.lt.s32.totalorder %v23_v6, 8  ;;  %v324_v16 = vld [vmem:[%s476_s0 + $0x60] sm:$0xff]  ;;  %v336_v20 = vld [vmem:[%s477_s1 + $0x8] sm:$0xff]  ;;  %v327_v21 = vld [vmem:[%s476_s0 + $0x78] sm:$0xff]  ;;  %v446_v31 = vsub.s32 2, %v376_v5 }
   0x7   :  { %v21_v12 = vsel %vm20_vm0, %v16_v11, %v9_v0  ;;  %v329_v22 = vld [vmem:[%s476_s0 + $0x88] sm:$0xff]  ;;  %v328_v23 = vld [vmem:[%s476_s0 + $0x80] sm:$0xff]  ;;  %v331_v24 = vld [vmem:[%s476_s0 + $0x98] sm:$0xff]  ;;  %v449_v32 = vsub.s32 0, %v376_v5  ;;  %v452_v33 = vsub.s32 3, %v376_v5  ;;  %v455_v34 = vsub.s32 1, %v376_v5 }
   0x8   :  { %107 = vperm.xlu1 %340, %v319_v7   ;;  %87 = vperm.xlu0 %339, %v317_v8   ;;  %v26_v13 = vsel %vm25_vm1, %v21_v12, %v9_v0  ;;  %v330_v25 = vld [vmem:[%s476_s0 + $0x90] sm:$0xff]  ;;  %v333_v26 = vld [vmem:[%s476_s0 + $0xa8] sm:$0xff]  ;;  %v332_v27 = vld [vmem:[%s476_s0 + $0xa0] sm:$0xff]  ;;  %v172_v58 = vsub.s32 4, %v376_v5  ;;  %v182_v60 = vsub.s32 5, %v376_v5  ;;  %v192_v1 = vsub.s32 6, %v376_v5 }
   0x9   :  { %29 = vst [vmem:[#allocation7] sm:$0xf] %v26_v13  ;;  %v335_v28 = vld [vmem:[%s476_s0 + $0xb8] sm:$0xff]  ;;  %v334_v29 = vld [vmem:[%s476_s0 + $0xb0] sm:$0xff]  ;;  %v202_v2 = vsub.s32 7, %v376_v5 }
   0xa   :  { %v337_v30 = vld [vmem:[%s477_s1 + $0x10] sm:$0xff] }
   0xc   :  { %127 = vperm.xlu1 %340, %v320_v9   ;;  %120 = vperm.xlu0 %339, %v69_v10  }
  0x10   :  { %147 = vperm.xlu1 %340, %v322_v14   ;;  %137 = vperm.xlu0 %339, %v321_v15   ;;  %v74_v35 = vld [vmem:[#allocation7] sm:$0xf] }
  0x11   :  { %v103_v38 = vrot.slane %v74_v35, %v446_v31  ;;  %v83_v39 = vrot.slane %v74_v35, %v449_v32  ;;  %v113_v40 = vrot.slane %v74_v35, %v452_v33  ;;  %v93_v41 = vrot.slane %v74_v35, %v455_v34 }
  0x14   :  { %167 = vperm.xlu1 %340, %v324_v16   ;;  %157 = vperm.xlu0 %339, %v323_v17  }
  0x18   :  { %187 = vperm.xlu1 %340, %v326_v18   ;;  %177 = vperm.xlu0 %339, %v325_v19  }
  0x1c   :  { %214 = vperm.xlu1 %340, %v336_v20   ;;  %197 = vperm.xlu0 %339, %v327_v21  }
  0x20   :  { %231 = vperm.xlu1 %340, %v329_v22   ;;  %221 = vperm.xlu0 %339, %v328_v23  }
  0x24   :  { %251 = vperm.xlu1 %340, %v331_v24   ;;  %241 = vperm.xlu0 %339, %v330_v25  }
  0x28   :  { %271 = vperm.xlu1 %340, %v333_v26   ;;  %261 = vperm.xlu0 %339, %v332_v27  }
  0x2c   :  { %291 = vperm.xlu1 %340, %v335_v28   ;;  %281 = vperm.xlu0 %339, %v334_v29  }
  0x30   :  { %308 = vperm.xlu0 %339, %v337_v30  }
  0x7f   :  { %v98_v36 = vpop.permute.xlu1 %97  ;;  %v78_v37 = vpop.permute.xlu0 %77 }
  0x80   :  { %v104_v44 = vmul.f32 %v103_v38, %v98_v36  ;;  %v84_v45 = vmul.f32 %v83_v39, %v78_v37 }
  0x83   :  { %v108_v42 = vpop.permute.xlu1 %107  ;;  %v88_v43 = vpop.permute.xlu0 %87 }
  0x84   :  { %v114_v46 = vmul.f32 %v113_v40, %v108_v42  ;;  %v94_v47 = vmul.f32 %v93_v41, %v88_v43 }
  0x86   :  { %v116_v48 = vadd.f32 %v114_v46, %v104_v44  ;;  %v115_v49 = vadd.f32 %v94_v47, %v84_v45 }
  0x87   :  { %v128_v50 = vpop.permute.xlu1 %127  ;;  %v121_v51 = vpop.permute.xlu0 %120 }
  0x88   :  { %v117_v52 = vadd.f32 %v116_v48, %v115_v49 }
  0x8a   :  { %v123_v53 = vadd.f32 %v121_v51, %v117_v52 }
  0x8b   :  { %v148_v54 = vpop.permute.xlu1 %147  ;;  %v138_v55 = vpop.permute.xlu0 %137 }
  0x8c   :  { %v124_v56 = vmax.f32 %v123_v53, 0.0 }
  0x8e   :  { %v153_v61 = vrot.slane %v124_v56, %v446_v31  ;;  %v133_v62 = vrot.slane %v124_v56, %v449_v32  ;;  %v143_v63 = vrot.slane %v124_v56, %v455_v34  ;;  %v163_v0 = vrot.slane %v124_v56, %v452_v33 }
  0x8f   :  { %v168_v57 = vpop.permute.xlu1 %167  ;;  %v158_v59 = vpop.permute.xlu0 %157  ;;  %v173_v3 = vrot.slane %v124_v56, %v172_v58  ;;  %v183_v7 = vrot.slane %v124_v56, %v182_v60  ;;  %v193_v12 = vrot.slane %v124_v56, %v192_v1  ;;  %v203_v14 = vrot.slane %v124_v56, %v202_v2 }
  0x90   :  { %v154_v8 = vmul.f32 %v153_v61, %v148_v54  ;;  %v134_v9 = vmul.f32 %v133_v62, %v128_v50  ;;  %v144_v10 = vmul.f32 %v143_v63, %v138_v55  ;;  %v164_v11 = vmul.f32 %v163_v0, %v158_v59 }
  0x91   :  { %v174_v15 = vmul.f32 %v173_v3, %v168_v57 }
  0x92   :  { %v205_v18 = vadd.f32 %v144_v10, %v134_v9  ;;  %v206_v19 = vadd.f32 %v164_v11, %v154_v8 }
  0x93   :  { %v188_v4 = vpop.permute.xlu1 %187  ;;  %v178_v6 = vpop.permute.xlu0 %177 }
  0x94   :  { %v184_v13 = vmul.f32 %v183_v7, %v178_v6  ;;  %v194_v20 = vmul.f32 %v193_v12, %v188_v4  ;;  %v209_v25 = vadd.f32 %v206_v19, %v205_v18 }
  0x96   :  { %v207_v22 = vadd.f32 %v184_v13, %v174_v15 }
  0x97   :  { %v215_v16 = vpop.permute.xlu1 %214  ;;  %v198_v17 = vpop.permute.xlu0 %197 }
  0x98   :  { %v204_v21 = vmul.f32 %v203_v14, %v198_v17 }
  0x9a   :  { %v208_v5 = vadd.f32 %v204_v21, %v194_v20 }
  0x9b   :  { %v232_v23 = vpop.permute.xlu1 %231  ;;  %v222_v24 = vpop.permute.xlu0 %221 }
  0x9c   :  { %v210_v26 = vadd.f32 %v208_v5, %v207_v22 }
  0x9e   :  { %v211_v27 = vadd.f32 %v210_v26, %v209_v25 }
  0x9f   :  { %v252_v28 = vpop.permute.xlu1 %251  ;;  %v242_v29 = vpop.permute.xlu0 %241 }
  0xa0   :  { %v217_v30 = vadd.f32 %v215_v16, %v211_v27 }
  0xa2   :  { %v218_v35 = vmax.f32 %v217_v30, 0.0 }
  0xa3   :  { %v272_v36 = vpop.permute.xlu1 %271  ;;  %v262_v37 = vpop.permute.xlu0 %261 }
  0xa4   :  { %v237_v38 = vrot.slane %v218_v35, %v455_v34  ;;  %v227_v39 = vrot.slane %v218_v35, %v449_v32  ;;  %v257_v40 = vrot.slane %v218_v35, %v452_v33  ;;  %v247_v41 = vrot.slane %v218_v35, %v446_v31 }
  0xa5   :  { %v277_v42 = vrot.slane %v218_v35, %v182_v60  ;;  %v267_v43 = vrot.slane %v218_v35, %v172_v58  ;;  %v297_v44 = vrot.slane %v218_v35, %v202_v2  ;;  %v287_v45 = vrot.slane %v218_v35, %v192_v1 }
  0xa6   :  { %v238_v46 = vmul.f32 %v237_v38, %v232_v23  ;;  %v228_v47 = vmul.f32 %v227_v39, %v222_v24  ;;  %v258_v48 = vmul.f32 %v257_v40, %v252_v28  ;;  %v248_v49 = vmul.f32 %v247_v41, %v242_v29 }
  0xa7   :  { %v278_v50 = vmul.f32 %v277_v42, %v272_v36  ;;  %v268_v51 = vmul.f32 %v267_v43, %v262_v37  ;;  %v292_v52 = vpop.permute.xlu1 %291  ;;  %v282_v53 = vpop.permute.xlu0 %281 }
  0xa8   :  { %v299_v54 = vadd.f32 %v238_v46, %v228_v47  ;;  %v300_v34 = vadd.f32 %v258_v48, %v248_v49  ;;  %v298_v55 = vmul.f32 %v297_v44, %v292_v52  ;;  %v288_v32 = vmul.f32 %v287_v45, %v282_v53 }
  0xa9   :  { %v301_v56 = vadd.f32 %v278_v50, %v268_v51 }
  0xaa   :  { %v302_v33 = vadd.f32 %v298_v55, %v288_v32  ;;  %v303_v57 = vadd.f32 %v300_v34, %v299_v54 }
  0xab   :  { %v309_v58 = vpop.permute.xlu0 %308 }
  0xac   :  { %v304_v31 = vadd.f32 %v302_v33, %v301_v56 }
  0xae   :  { %v305_v59 = vadd.f32 %v304_v31, %v303_v57 }
  0xb0   :  { %v311_v60 = vadd.f32 %v309_v58, %v305_v59 }
  0xb2   :  { %312 = vst [vmem:[%s480_s4] sm:$0xf] %v311_v60 }

</bundles_post_ra>
